<compile_context>
chip_gen: v7x
topology: tpu7x:2x2x1
jax: 0.10.0
libtpu: 0.0.40
codegen_flags: <defaults>
</compile_context>

<pallas_src>
import jax
import jax.numpy as jnp
from jax.experimental import pallas as pl
from jax.experimental.pallas import tpu as pltpu

LANE = 128


def mlp_logsoftmax_kernel(x_ref,
                          w0_ref, b0_ref,
                          w1_ref, b1_ref,
                          w2_ref, b2_ref,
                          out_ref):
    # Layer 0 (input Linear): f32 operands, f32 accumulation on the MXU.
    h = jnp.dot(x_ref[...], w0_ref[...],
                preferred_element_type=jnp.float32) + b0_ref[...]

    # Hidden block 1: Dropout (eval -> identity), ReLU (VPU), Linear.
    h = jnp.maximum(h, 0.0)
    h = jnp.dot(h, w1_ref[...],
                preferred_element_type=jnp.float32) + b1_ref[...]

    # Hidden block 2: Dropout (eval -> identity), ReLU, Linear.
    # Head is lane-padded to 128: padded columns of w2 are zero and their
    # bias is -1e30.
    h = jnp.maximum(h, 0.0)
    logits = jnp.dot(h, w2_ref[...],
                     preferred_element_type=jnp.float32) + b2_ref[...]

    # LogSoftmax over dim=1, numerically stable.  Padded lanes sit at -1e30:
    # they never win the max and exp() underflows to exactly 0, so the real
    # lanes' log-softmax values are unchanged.
    m = jnp.max(logits, axis=1, keepdims=True)
    shifted = logits - m
    lse = jnp.log(jnp.sum(jnp.exp(shifted), axis=1, keepdims=True))
    out_ref[...] = (shifted - lse).astype(out_ref.dtype)


def _round_up(v, m):
    return ((v + m - 1) // m) * m


def prepare_params(params):
    """One-time parameter prep (outside the per-call path).

    Biases -> (1, N) rows (plain add, no in-kernel broadcast_in_dim); head
    weight / bias are lane-padded to a multiple of 128 so the output store is
    lane-dense.  Padded bias lanes get -1e30 so log-softmax ignores them.
    """
    (w0, b0), (w1, b1), (w2, b2) = params
    n_out = w2.shape[1]
    n_pad = _round_up(n_out, LANE)
    w2p = jnp.pad(w2, ((0, 0), (0, n_pad - n_out)))
    b2p = jnp.pad(b2, ((0, n_pad - n_out),), constant_values=-1e30)
    return ((w0, b0.reshape(1, -1)),
            (w1, b1.reshape(1, -1)),
            (w2p, b2p.reshape(1, -1)),
            n_out)


def _default_num_batch_tiles():
    # v7x has 2 TensorCores per chip: split the batch across them.  v5e/v6e
    # have a single TC, so extra grid steps would be pure serial overhead.
    try:
        kind = jax.devices()[0].device_kind.lower()
    except Exception:
        return 1
    return 2 if "v7" in kind else 1


def classifier_v1_pallas(x, prepared, *, num_batch_tiles=None):
    """x: [B, input_size] f32; prepared: output of prepare_params()."""
    (w0, b0), (w1, b1), (w2p, b2p), n_out = prepared
    B, F = x.shape
    n0, n1, n2p = w0.shape[1], w1.shape[1], w2p.shape[1]

    if num_batch_tiles is None:
        num_batch_tiles = _default_num_batch_tiles()

    if num_batch_tiles <= 1:
        tm = B                                   # single grid step, full batch
    else:
        tm = _round_up(pl.cdiv(B, num_batch_tiles), 8)
    grid = (pl.cdiv(B, tm),)

    def const_spec(shape):
        # Same block for every grid step -> fetched once, VMEM-resident.
        return pl.BlockSpec(shape, lambda i: tuple(0 for _ in shape))

    out_padded = pl.pallas_call(
        mlp_logsoftmax_kernel,
        out_shape=jax.ShapeDtypeStruct((B, n2p), jnp.float32),
        grid=grid,
        in_specs=[
            pl.BlockSpec((tm, F), lambda i: (i, 0)),      # x: batch-tiled
            const_spec((F, n0)), const_spec((1, n0)),
            const_spec((n0, n1)), const_spec((1, n1)),
            const_spec((n1, n2p)), const_spec((1, n2p)),
        ],
        out_specs=pl.BlockSpec((tm, n2p), lambda i: (i, 0)),
        compiler_params=pltpu.CompilerParams(
            dimension_semantics=("parallel",)),
    )(x, w0, b0, w1, b1, w2p, b2p)

    # Drop the padded logit lanes (real classes are lanes [0, n_out)).
    return out_padded[:, :n_out]


def init_linear(key, fan_in, fan_out):
    # Mimics PyTorch nn.Linear default init: U(-1/sqrt(fan_in), 1/sqrt(fan_in)).
    kw, kb = jax.random.split(key)
    bound = 1.0 / jnp.sqrt(jnp.float32(fan_in))
    w = jax.random.uniform(kw, (fan_in, fan_out), jnp.float32, -bound, bound)
    b = jax.random.uniform(kb, (fan_out,), jnp.float32, -bound, bound)
    return w, b


def reference_forward(x, params):
    (w0, b0), (w1, b1), (w2, b2) = params
    h = x @ w0 + b0
    h = jnp.maximum(h, 0.0) @ w1 + b1
    h = jnp.maximum(h, 0.0) @ w2 + b2
    return jax.nn.log_softmax(h, axis=1)


if __name__ == "__main__":
    # config: input_size=32, neurons_list=[64, 32, 16], activation=relu,
    # prob_dropout (eval mode -> identity), use_bias=True.
    # TODO(synk): training-mode dropout not implemented (eval-mode identity only);
    #             activation hard-coded to ReLU per config['activation'].
    B, input_size = 64, 32
    neurons = [64, 32, 16]

    key = jax.random.PRNGKey(0)
    kx, k0, k1, k2 = jax.random.split(key, 4)

    x = jax.random.normal(kx, (B, input_size), jnp.float32)
    params = [
        init_linear(k0, input_size, neurons[0]),
        init_linear(k1, neurons[0], neurons[1]),
        init_linear(k2, neurons[1], neurons[2]),
    ]

    prepared = prepare_params(params)   # one-time: bias rows + lane-padded head
    out = classifier_v1_pallas(x, prepared)
    out = jax.block_until_ready(out)

    ref = reference_forward(x, params)
    assert out.shape == (B, neurons[-1])
    assert jnp.allclose(out, ref, atol=2e-3, rtol=2e-3), "mismatch vs reference"

    print("KERNEL_OK")
</pallas_src>

<mosaic_0001>
module attributes {stable_mosaic.version = 11 : i64} {
  func.func @mlp_logsoftmax_kernel(%arg0: i32, %arg1: memref<64x32xf32, #tpu.memory_space<vmem>>, %arg2: memref<32x64xf32, #tpu.memory_space<vmem>>, %arg3: memref<1x64xf32, #tpu.memory_space<vmem>>, %arg4: memref<64x32xf32, #tpu.memory_space<vmem>>, %arg5: memref<1x32xf32, #tpu.memory_space<vmem>>, %arg6: memref<32x128xf32, #tpu.memory_space<vmem>>, %arg7: memref<1x128xf32, #tpu.memory_space<vmem>>, %arg8: memref<64x128xf32, #tpu.memory_space<vmem>>) attributes {dimension_semantics = [#tpu.dimension_semantics<parallel>], iteration_bounds = array<i64: 1>, scalar_prefetch = 0 : i64, scratch_operands = 0 : i64, tpu.core_type = #tpu.core_type<tc>, window_params = [{transform_indices = @transform_0, window_bounds = array<i64: 64, 32>}, {pipeline_mode = #tpu.pipeline_mode<synchronous>, transform_indices = @transform_1, window_bounds = array<i64: 32, 64>}, {pipeline_mode = #tpu.pipeline_mode<synchronous>, transform_indices = @transform_2, window_bounds = array<i64: 1, 64>}, {pipeline_mode = #tpu.pipeline_mode<synchronous>, transform_indices = @transform_3, window_bounds = array<i64: 64, 32>}, {pipeline_mode = #tpu.pipeline_mode<synchronous>, transform_indices = @transform_4, window_bounds = array<i64: 1, 32>}, {pipeline_mode = #tpu.pipeline_mode<synchronous>, transform_indices = @transform_5, window_bounds = array<i64: 32, 128>}, {pipeline_mode = #tpu.pipeline_mode<synchronous>, transform_indices = @transform_6, window_bounds = array<i64: 1, 128>}, {transform_indices = @transform_7, window_bounds = array<i64: 64, 128>}]} {
    %c0 = arith.constant 0 : index
    %c0_0 = arith.constant 0 : index
    %0 = vector.load %arg1[%c0, %c0_0] : memref<64x32xf32, #tpu.memory_space<vmem>>, vector<64x32xf32>
    %c0_1 = arith.constant 0 : index
    %c0_2 = arith.constant 0 : index
    %1 = vector.load %arg2[%c0_1, %c0_2] : memref<32x64xf32, #tpu.memory_space<vmem>>, vector<32x64xf32>
    %cst = arith.constant dense<0.000000e+00> : vector<64x64xf32>
    %2 = tpu.matmul %0, %1, %cst {dimension_numbers = #tpu.dot_dimension_numbers<[1], [0], [0], [1], [0, 0, 1, 1], [], []>} : vector<64x32xf32>, vector<32x64xf32>, vector<64x64xf32> -> vector<64x64xf32>
    %c0_3 = arith.constant 0 : index
    %c0_4 = arith.constant 0 : index
    %3 = vector.load %arg3[%c0_3, %c0_4] : memref<1x64xf32, #tpu.memory_space<vmem>>, vector<1x64xf32>
    %4 = vector.broadcast %3 : vector<1x64xf32> to vector<64x64xf32>
    %5 = arith.addf %2, %4 : vector<64x64xf32>
    %cst_5 = arith.constant 0.000000e+00 : f32
    %6 = vector.broadcast %cst_5 : f32 to vector<64x64xf32>
    %7 = arith.maximumf %5, %6 : vector<64x64xf32>
    %c0_6 = arith.constant 0 : index
    %c0_7 = arith.constant 0 : index
    %8 = vector.load %arg4[%c0_6, %c0_7] : memref<64x32xf32, #tpu.memory_space<vmem>>, vector<64x32xf32>
    %cst_8 = arith.constant dense<0.000000e+00> : vector<64x32xf32>
    %9 = tpu.matmul %7, %8, %cst_8 {dimension_numbers = #tpu.dot_dimension_numbers<[1], [0], [0], [1], [0, 0, 1, 1], [], []>} : vector<64x64xf32>, vector<64x32xf32>, vector<64x32xf32> -> vector<64x32xf32>
    %c0_9 = arith.constant 0 : index
    %c0_10 = arith.constant 0 : index
    %10 = vector.load %arg5[%c0_9, %c0_10] : memref<1x32xf32, #tpu.memory_space<vmem>>, vector<1x32xf32>
    %11 = vector.broadcast %10 : vector<1x32xf32> to vector<64x32xf32>
    %12 = arith.addf %9, %11 : vector<64x32xf32>
    %cst_11 = arith.constant 0.000000e+00 : f32
    %13 = vector.broadcast %cst_11 : f32 to vector<64x32xf32>
    %14 = arith.maximumf %12, %13 : vector<64x32xf32>
    %c0_12 = arith.constant 0 : index
    %c0_13 = arith.constant 0 : index
    %15 = vector.load %arg6[%c0_12, %c0_13] : memref<32x128xf32, #tpu.memory_space<vmem>>, vector<32x128xf32>
    %cst_14 = arith.constant dense<0.000000e+00> : vector<64x128xf32>
    %16 = tpu.matmul %14, %15, %cst_14 {dimension_numbers = #tpu.dot_dimension_numbers<[1], [0], [0], [1], [0, 0, 1, 1], [], []>} : vector<64x32xf32>, vector<32x128xf32>, vector<64x128xf32> -> vector<64x128xf32>
    %c0_15 = arith.constant 0 : index
    %c0_16 = arith.constant 0 : index
    %17 = vector.load %arg7[%c0_15, %c0_16] : memref<1x128xf32, #tpu.memory_space<vmem>>, vector<1x128xf32>
    %18 = vector.broadcast %17 : vector<1x128xf32> to vector<64x128xf32>
    %19 = arith.addf %16, %18 : vector<64x128xf32>
    %cst_17 = arith.constant dense<0xFF800000> : vector<64xf32>
    %20 = vector.multi_reduction <maximumf>, %19, %cst_17 [1] : vector<64x128xf32> to vector<64xf32>
    %21 = vector.shape_cast %20 : vector<64xf32> to vector<64x1xf32>
    %22 = vector.broadcast %21 : vector<64x1xf32> to vector<64x128xf32>
    %23 = arith.subf %19, %22 : vector<64x128xf32>
    %24 = math.exp %23 : vector<64x128xf32>
    %cst_18 = arith.constant dense<0.000000e+00> : vector<64xf32>
    %25 = vector.multi_reduction <add>, %24, %cst_18 [1] : vector<64x128xf32> to vector<64xf32>
    %26 = vector.shape_cast %25 : vector<64xf32> to vector<64x1xf32>
    %27 = math.log %26 : vector<64x1xf32>
    %28 = vector.broadcast %27 : vector<64x1xf32> to vector<64x128xf32>
    %29 = arith.subf %23, %28 : vector<64x128xf32>
    %c0_19 = arith.constant 0 : index
    %c0_20 = arith.constant 0 : index
    %30 = vector.load %arg8[%c0_19, %c0_20] : memref<64x128xf32, #tpu.memory_space<vmem>>, vector<64x128xf32>
    tpu.vector_store %arg8[%c0_19, %c0_20], %29 {strides = array<i32>} : memref<64x128xf32, #tpu.memory_space<vmem>>, vector<64x128xf32>,
    return
  }
  func.func @transform_0(%arg0: i32) -> (i32, i32) {
    %c0_i32 = arith.constant 0 : i32
    %c0_i32_0 = arith.constant 0 : i32
    return %arg0, %c0_i32 : i32, i32
  }
  func.func @transform_1(%arg0: i32) -> (i32, i32) {
    %c0_i32 = arith.constant 0 : i32
    %c0_i32_0 = arith.constant 0 : i32
    %c0_i32_1 = arith.constant 0 : i32
    return %c0_i32, %c0_i32_0 : i32, i32
  }
  func.func @transform_2(%arg0: i32) -> (i32, i32) {
    %c0_i32 = arith.constant 0 : i32
    %c0_i32_0 = arith.constant 0 : i32
    %c0_i32_1 = arith.constant 0 : i32
    return %c0_i32, %c0_i32_0 : i32, i32
  }
  func.func @transform_3(%arg0: i32) -> (i32, i32) {
    %c0_i32 = arith.constant 0 : i32
    %c0_i32_0 = arith.constant 0 : i32
    %c0_i32_1 = arith.constant 0 : i32
    return %c0_i32, %c0_i32_0 : i32, i32
  }
  func.func @transform_4(%arg0: i32) -> (i32, i32) {
    %c0_i32 = arith.constant 0 : i32
    %c0_i32_0 = arith.constant 0 : i32
    %c0_i32_1 = arith.constant 0 : i32
    return %c0_i32, %c0_i32_0 : i32, i32
  }
  func.func @transform_5(%arg0: i32) -> (i32, i32) {
    %c0_i32 = arith.constant 0 : i32
    %c0_i32_0 = arith.constant 0 : i32
    %c0_i32_1 = arith.constant 0 : i32
    return %c0_i32, %c0_i32_0 : i32, i32
  }
  func.func @transform_6(%arg0: i32) -> (i32, i32) {
    %c0_i32 = arith.constant 0 : i32
    %c0_i32_0 = arith.constant 0 : i32
    %c0_i32_1 = arith.constant 0 : i32
    return %c0_i32, %c0_i32_0 : i32, i32
  }
  func.func @transform_7(%arg0: i32) -> (i32, i32) {
    %c0_i32 = arith.constant 0 : i32
    %c0_i32_0 = arith.constant 0 : i32
    return %arg0, %c0_i32 : i32, i32
  }
}

</mosaic_0001>

<bundles_post_ra>
// kernel: tpu_custom_call.1
= control target key start
LH: loop header
LB: loop body
LE: loop exit
PB: predicated region body
PF: predicated region fallthrough
CT: control target
= control target key end

     0   :  { %vm46_vm0 = vcmask 261120   ;;  %s1003_s0 = inlined_call_operand.vmem [shape: f32[64,32], index: 0, kind: input, shape index: {}]   ;;  %s1004_s1 = inlined_call_operand.vmem [shape: f32[32,64], index: 1, kind: input, shape index: {}]   ;;  %s1005_s2 = inlined_call_operand.vmem [shape: f32[1,64], index: 2, kind: input, shape index: {}]   ;;  %s1006_s3 = inlined_call_operand.vmem [shape: f32[64,32], index: 3, kind: input, shape index: {}]   ;;  %s1007_s4 = inlined_call_operand.vmem [shape: f32[1,32], index: 4, kind: input, shape index: {}]   ;;  %s1008_s5 = inlined_call_operand.vmem [shape: f32[32,128], index: 5, kind: input, shape index: {}]   ;;  %s1009_s6 = inlined_call_operand.vmem [shape: f32[1,128], index: 6, kind: input, shape index: {}]   ;;  %s1010_s7 = inlined_call_operand.hbm [shape: f32[64,128], index: 7, kind: output, shape index: {}]  }
   0x1   :  { %v35_v0 = vld [vmem:[%s1004_s1] sm:$0xff]  ;;  %v36_v1 = vld [vmem:[%s1004_s1 + $0x8] sm:$0xff]  ;;  %v37_v2 = vld [vmem:[%s1004_s1 + $0x10] sm:$0xff] }
   0x2   :  { %v716_v3 = vpack.c.bf16 %v36_v1, %v35_v0  ;;  %v38_v4 = vld [vmem:[%s1004_s1 + $0x18] sm:$0xff]  ;;  %v27_v5 = vld [vmem:[%s1003_s0] sm:$0xff]  ;;  %v185_v8 = vld [vmem:[%s1006_s3 + $0x8] sm:$0xff] }
   0x3   :  { %v720_v6 = vpack.c.bf16 %v38_v4, %v37_v2  ;;  %656 = vmatprep.mubr.msk.f32.mxu0 %vm46_vm0, %v27_v5  ;;  %v184_v7 = vld [vmem:[%s1006_s3] sm:$0xff]  ;;  %v186_v9 = vld [vmem:[%s1006_s3 + $0x10] sm:$0xff]  ;;  %v187_v11 = vld [vmem:[%s1006_s3 + $0x18] sm:$0xff] }
   0x4   :  { %717 = vmatprep.subr.bf16.mxu0 %v716_v3  ;;  %v724_v10 = vpack.c.bf16 %v185_v8, %v184_v7  ;;  %v728_v12 = vpack.c.bf16 %v187_v11, %v186_v9  ;;  %v188_v13 = vld [vmem:[%s1006_s3 + $0x20] sm:$0xff]  ;;  %v189_v14 = vld [vmem:[%s1006_s3 + $0x28] sm:$0xff] }
   0x5   :  { %719 = vmatpush3.bf16.msra.mxu0 %v716_v3 }
   0x6   :  { %721 = vmatprep.subr.bf16.mxu0 %v720_v6 }
   0x7   :  { %12 = vsyncpa [#allocation3], 0  ;;  %725 = vmatprep.subr.bf16.mxu1 %v724_v10  ;;  %v28_v15 = vld [vmem:[%s1003_s0 + $0x8] sm:$0xff]  ;;  %v29_v16 = vld [vmem:[%s1003_s0 + $0x10] sm:$0xff]  ;;  %v732_v17 = vpack.c.bf16 %v189_v14, %v188_v13  ;;  %vm199_vm1 = vcmask 523264  }
   0x8   :  { %727 = vmatpush3.bf16.msra.mxu1 %v724_v10  ;;  %v30_v18 = vld [vmem:[%s1003_s0 + $0x18] sm:$0xff]  ;;  %v31_v19 = vld [vmem:[%s1003_s0 + $0x20] sm:$0xff]  ;;  %v32_v20 = vld [vmem:[%s1003_s0 + $0x28] sm:$0xff] }
   0x9   :  { %723 = vmatpush3.bf16.msra.mxu0 %v720_v6  ;;  %729 = vmatprep.subr.bf16.mxu1 %v728_v12  ;;  %v33_v21 = vld [vmem:[%s1003_s0 + $0x30] sm:$0xff]  ;;  %v34_v22 = vld [vmem:[%s1003_s0 + $0x38] sm:$0xff]  ;;  %v337_v26 = vld [vmem:[%s1008_s5] sm:$0xff] }
   0xa   :  { %v190_v23 = vld [vmem:[%s1006_s3 + $0x30] sm:$0xff]  ;;  %v191_v24 = vld [vmem:[%s1006_s3 + $0x38] sm:$0xff]  ;;  %v338_v27 = vld [vmem:[%s1008_s5 + $0x8] sm:$0xff] }
   0xb   :  { %v736_v25 = vpack.c.bf16 %v191_v24, %v190_v23  ;;  %v339_v28 = vld [vmem:[%s1008_s5 + $0x10] sm:$0xff]  ;;  %v740_v29 = vpack.c.bf16 %v338_v27, %v337_v26  ;;  %v340_v30 = vld [vmem:[%s1008_s5 + $0x18] sm:$0xff]  ;;  %v581_v32 = vld [vmem:[%s1005_s2] ss:$0 sm:$0xff] }
   0xc   :  { %657 = vmatmul.mubr.msk.f32.vlgmr.msra.gmra.mrb[0].mxu0 %vm46_vm0, %v28_v15  ;;  %731 = vmatpush3.bf16.msra.mxu1 %v728_v12  ;;  %v744_v31 = vpack.c.bf16 %v340_v30, %v339_v28  ;;  %v590_v57 = vld [vmem:[%s1007_s4] ss:$0 sm:$0xff] }
   0xd   :  { %659 = vmatprep.mubr.msk.f32.mxu0 %vm46_vm0, %v29_v16  ;;  %733 = vmatprep.subr.bf16.mxu1 %v732_v17 }
   0xe   :  { %741 = vmatprep.subr.bf16.mxu0 %v740_v29 }
   0xf   :  { %743 = vmatpush3.bf16.msra.mxu0 %v740_v29 }
  0x10   :  { %660 = vmatmul.mubr.msk.f32.gmra.mrb[2].mxu0 %vm46_vm0, %v30_v18  ;;  %735 = vmatpush3.bf16.msra.mxu1 %v732_v17  ;;  %v599_v18 = vld [vmem:[%s1009_s6] ss:$0 sm:$0xff]  ;;  %s811_s6 = smov [#allocation2]  }
  0x11   :  { %662 = vmatprep.mubr.msk.f32.mxu0 %vm46_vm0, %v31_v19  ;;  %737 = vmatprep.subr.bf16.mxu1 %v736_v25  ;;  %s570_s25 = sshll.u32 %s811_s6, 4  ;;  %s571_s25 = int_to_ptr.vmem [resolvable:$true] %s570_s25 }
  0x12   :  { %745 = vmatprep.subr.bf16.mxu0 %v744_v31  ;;  %s787_s26 = scalar_lea.vmem %s571_s25, 1024  ;;  %p792_p1 = scmp.lt.s32.totalorder %s571_s25, %s571_s25 }
  0x13   :  { %747 = vmatpush3.bf16.msra.mxu0 %v744_v31  ;;  %p788_p0 = scmp.ne.s32.totalorder %s571_s25, %s787_s26  ;;  %p793_p2 = scmp.lt.s32.totalorder %s787_s26, %s787_s26 }
  0x14   :  { %663 = vmatmul.mubr.msk.f32.gmra.mrb[4].mxu0 %vm46_vm0, %v32_v20  ;;  %739 = vmatpush3.bf16.msra.mxu1 %v736_v25 }
  0x15   :  { %665 = vmatprep.mubr.msk.f32.mxu0 %vm46_vm0, %v33_v21  ;;  %748 = vmatprep.subr.bf16.mxu1 %v740_v29  ;;  %p794_p3 = por %p793_p2, %p792_p1 }
  0x17   :  { %p795_p4 = pnand %p794_p3, %p788_p0 }
  0x18   :  { %666 = vmatmul.mubr.msk.f32.gmra.mrb[6].mxu0 %vm46_vm0, %v34_v22 }
  0xdf   :  { %v658_v33 = vpop.f32.mrb[0].mxu0 }
  0xe0   :  { %v143_v34 = vadd.f32 %v658_v33, %v581_v32  ;;  %v137_v35 = vpop.f32.mrb[1].mxu0 }
  0xe1   :  { %v138_v36 = vadd.f32 %v581_v32, %v137_v35 }
  0xe2   :  { %v177_v39 = vmax.f32 %v143_v34, 0.0 }
  0xe3   :  { %v176_v37 = vmax.f32 %v138_v36, 0.0  ;;  %v661_v38 = vpop.f32.mrb[2].mxu0 }
  0xe4   :  { %v153_v40 = vadd.f32 %v661_v38, %v581_v32  ;;  %v147_v41 = vpop.f32.mrb[3].mxu0 }
  0xe5   :  { %v148_v42 = vadd.f32 %v581_v32, %v147_v41  ;;  %684 = vmatprep.mubr.msk.f32.mxu1 %vm199_vm1, %v176_v37 }
  0xe6   :  { %685 = vmatmul.mubr.msk.f32.vlgmr.msra.gmra.mrb[0].mxu1 %vm199_vm1, %v177_v39  ;;  %v179_v45 = vmax.f32 %v153_v40, 0.0 }
  0xe7   :  { %v178_v43 = vmax.f32 %v148_v42, 0.0  ;;  %v664_v44 = vpop.f32.mrb[4].mxu0  ;;  %750 = vmatpush3.bf16.msra.mxu1 %v740_v29 }
  0xe8   :  { %v163_v46 = vadd.f32 %v664_v44, %v581_v32  ;;  %v157_v47 = vpop.f32.mrb[5].mxu0  ;;  %749 = vmatprep.subr.bf16.mxu1 %v744_v31 }
  0xe9   :  { %v158_v48 = vadd.f32 %v581_v32, %v157_v47  ;;  %687 = vmatprep.mubr.msk.f32.mxu1 %vm199_vm1, %v178_v43 }
  0xea   :  { %v181_v49 = vmax.f32 %v163_v46, 0.0  ;;  %688 = vmatmul.mubr.msk.f32.gmra.mrb[2].mxu1 %vm199_vm1, %v179_v45 }
  0xeb   :  { %v180_v50 = vmax.f32 %v158_v48, 0.0  ;;  %v667_v51 = vpop.f32.mrb[6].mxu0  ;;  %751 = vmatpush3.bf16.msra.mxu1 %v744_v31 }
  0xec   :  { %v173_v52 = vadd.f32 %v667_v51, %v581_v32  ;;  %v167_v53 = vpop.f32.mrb[7].mxu0 }
  0xed   :  { %v168_v54 = vadd.f32 %v581_v32, %v167_v53  ;;  %690 = vmatprep.mubr.msk.f32.mxu1 %vm199_vm1, %v180_v50 }
  0xee   :  { %v183_v55 = vmax.f32 %v173_v52, 0.0  ;;  %691 = vmatmul.mubr.msk.f32.gmra.mrb[4].mxu1 %vm199_vm1, %v181_v49 }
  0xef   :  { %v182_v56 = vmax.f32 %v168_v54, 0.0 }
  0xf1   :  { %693 = vmatprep.mubr.msk.f32.mxu1 %vm199_vm1, %v182_v56 }
  0xf2   :  { %694 = vmatmul.mubr.msk.f32.gmra.mrb[6].mxu1 %vm199_vm1, %v183_v55 }
 0x1b9   :  { %v686_v58 = vpop.f32.mrb[0].mxu1 }
 0x1ba   :  { %v296_v59 = vadd.f32 %v686_v58, %v590_v57  ;;  %v290_v60 = vpop.f32.mrb[1].mxu1 }
 0x1bb   :  { %v291_v61 = vadd.f32 %v590_v57, %v290_v60 }
 0x1bc   :  { %v330_v0 = vmax.f32 %v296_v59, 0.0 }
 0x1bd   :  { %v329_v62 = vmax.f32 %v291_v61, 0.0  ;;  %v689_v63 = vpop.f32.mrb[2].mxu1 }
 0x1be   :  { %v306_v1 = vadd.f32 %v689_v63, %v590_v57  ;;  %v300_v2 = vpop.f32.mrb[3].mxu1 }
 0x1bf   :  { %v301_v3 = vadd.f32 %v590_v57, %v300_v2  ;;  %704 = vmatprep.mubr.msk.f32.mxu0 %vm46_vm0, %v329_v62 }
 0x1c0   :  { %705 = vmatmul.mubr.msk.f32.vlgmr.msra.gmra.mrb[8].mxu0 %vm46_vm0, %v330_v0  ;;  %v332_v6 = vmax.f32 %v306_v1, 0.0 }
 0x1c1   :  { %v331_v4 = vmax.f32 %v301_v3, 0.0  ;;  %v692_v5 = vpop.f32.mrb[4].mxu1 }
 0x1c2   :  { %v316_v7 = vadd.f32 %v692_v5, %v590_v57  ;;  %v310_v8 = vpop.f32.mrb[5].mxu1 }
 0x1c3   :  { %v311_v9 = vadd.f32 %v590_v57, %v310_v8  ;;  %707 = vmatprep.mubr.msk.f32.mxu0 %vm46_vm0, %v331_v4 }
 0x1c4   :  { %v334_v10 = vmax.f32 %v316_v7, 0.0  ;;  %708 = vmatmul.mubr.msk.f32.gmra.mrb[10].mxu0 %vm46_vm0, %v332_v6 }
 0x1c5   :  { %v333_v11 = vmax.f32 %v311_v9, 0.0  ;;  %v695_v12 = vpop.f32.mrb[6].mxu1 }
 0x1c6   :  { %v326_v13 = vadd.f32 %v695_v12, %v590_v57  ;;  %v320_v14 = vpop.f32.mrb[7].mxu1 }
 0x1c7   :  { %v321_v15 = vadd.f32 %v590_v57, %v320_v14  ;;  %710 = vmatprep.mubr.msk.f32.mxu0 %vm46_vm0, %v333_v11 }
 0x1c8   :  { %v336_v16 = vmax.f32 %v326_v13, 0.0  ;;  %711 = vmatmul.mubr.msk.f32.gmra.mrb[12].mxu0 %vm46_vm0, %v334_v10 }
 0x1c9   :  { %v335_v17 = vmax.f32 %v321_v15, 0.0 }
 0x1cb   :  { %713 = vmatprep.mubr.msk.f32.mxu1 %vm46_vm0, %v335_v17 }
 0x1cc   :  { %714 = vmatmul.mubr.msk.f32.vlgmr.msra.gmra.mrb[8].mxu1 %vm46_vm0, %v336_v16 }
 0x293   :  { %v706_v19 = vpop.f32.mrb[8].mxu0 }
 0x294   :  { %v444_v20 = vadd.f32 %v706_v19, %v599_v18  ;;  %v438_v21 = vpop.f32.mrb[9].mxu0 }
 0x295   :  { %v439_v23 = vadd.f32 %v599_v18, %v438_v21 }
 0x296   :  { %479 = vmax.xlane.f32.xlu0 %v444_v20 }
 0x297   :  { %v709_v22 = vpop.f32.mrb[10].mxu0 }
 0x298   :  { %v454_v24 = vadd.f32 %v709_v22, %v599_v18  ;;  %v448_v25 = vpop.f32.mrb[11].mxu0 }
 0x299   :  { %v449_v27 = vadd.f32 %v599_v18, %v448_v25 }
 0x29a   :  { %483 = vmax.xlane.f32.xlu1 %v454_v24  ;;  %477 = vmax.xlane.f32.xlu0 %v439_v23 }
 0x29b   :  { %v712_v26 = vpop.f32.mrb[12].mxu0 }
 0x29c   :  { %v458_v28 = vpop.f32.mrb[13].mxu0  ;;  %v464_v31 = vadd.f32 %v712_v26, %v599_v18 }
 0x29d   :  { %v459_v29 = vadd.f32 %v599_v18, %v458_v28 }
 0x29e   :  { %481 = vmax.xlane.f32.xlu1 %v449_v27 }
 0x29f   :  { %v715_v30 = vpop.f32.mrb[8].mxu1  ;;  %485 = vmax.xlane.f32.xlu0 %v459_v29 }
 0x2a0   :  { %v468_v32 = vpop.f32.mrb[9].mxu1  ;;  %v474_v34 = vadd.f32 %v715_v30, %v599_v18 }
 0x2a1   :  { %v469_v33 = vadd.f32 %v599_v18, %v468_v32 }
 0x2a2   :  { %487 = vmax.xlane.f32.xlu1 %v464_v31 }
 0x2a3   :  { %489 = vmax.xlane.f32.xlu0 %v469_v33 }
 0x2a6   :  { %491 = vmax.xlane.f32.xlu1 %v474_v34 }
 0x323   :  { %v480_v35 = vpop.xlane.xlu0 %479 }
 0x324   :  { %v959_v36 = vsub.f32 %v444_v20, %v480_v35 }
 0x326   :  { %v503_v37 = vmul.f32 1.442695, %v959_v36 }
 0x327   :  { %v484_v38 = vpop.xlane.xlu1 %483  ;;  %v478_v39 = vpop.xlane.xlu0 %477 }
 0x328   :  { %755 = vpow2.f32 %v503_v37  ;;  %v962_v40 = vsub.f32 %v454_v24, %v484_v38  ;;  %v964_v41 = vsub.f32 %v439_v23, %v478_v39 }
 0x32a   :  { %v507_v42 = vmul.f32 1.442695, %v962_v40  ;;  %v501_v43 = vmul.f32 1.442695, %v964_v41 }
 0x32b   :  { %v482_v44 = vpop.xlane.xlu1 %481 }
 0x32c   :  { %757 = vpow2.f32 %v507_v42  ;;  %v968_v45 = vsub.f32 %v449_v27, %v482_v44  ;;  %v486_v46 = vpop.xlane.xlu0 %485 }
 0x32d   :  { %759 = vpow2.f32 %v501_v43  ;;  %v970_v47 = vsub.f32 %v459_v29, %v486_v46 }
 0x32e   :  { %v505_v48 = vmul.f32 1.442695, %v968_v45 }
 0x32f   :  { %v488_v49 = vpop.xlane.xlu1 %487  ;;  %v509_v52 = vmul.f32 1.442695, %v970_v47 }
 0x330   :  { %761 = vpow2.f32 %v505_v48  ;;  %v973_v50 = vsub.f32 %v464_v31, %v488_v49  ;;  %v490_v51 = vpop.xlane.xlu0 %489 }
 0x331   :  { %v976_v53 = vsub.f32 %v469_v33, %v490_v51 }
 0x332   :  { %v756_v54 = vpop.eup %755  ;;  %v511_v55 = vmul.f32 1.442695, %v973_v50 }
 0x333   :  { %519 = vadd.xlane.f32.xlu1 %v756_v54  ;;  %v492_v56 = vpop.xlane.xlu1 %491  ;;  %v513_v58 = vmul.f32 1.442695, %v976_v53 }
 0x334   :  { %763 = vpow2.f32 %v511_v55  ;;  %v979_v57 = vsub.f32 %v474_v34, %v492_v56 }
 0x335   :  { %765 = vpow2.f32 %v509_v52 }
 0x336   :  { %v758_v59 = vpop.eup %757  ;;  %v515_v60 = vmul.f32 1.442695, %v979_v57 }
 0x337   :  { %v760_v61 = vpop.eup %759  ;;  %523 = vadd.xlane.f32.xlu1 %v758_v59 }
 0x338   :  { %767 = vpow2.f32 %v515_v60  ;;  %517 = vadd.xlane.f32.xlu0 %v760_v61 }
 0x339   :  { %769 = vpow2.f32 %v513_v58 }
 0x33a   :  { %v762_v62 = vpop.eup %761 }
 0x33c   :  { %521 = vadd.xlane.f32.xlu0 %v762_v62 }
 0x33e   :  { %v764_v63 = vpop.eup %763 }
 0x33f   :  { %v766_v0 = vpop.eup %765  ;;  %527 = vadd.xlane.f32.xlu1 %v764_v63 }
 0x340   :  { %525 = vadd.xlane.f32.xlu0 %v766_v0 }
 0x342   :  { %v768_v1 = vpop.eup %767 }
 0x343   :  { %v770_v2 = vpop.eup %769  ;;  %531 = vadd.xlane.f32.xlu1 %v768_v1 }
 0x344   :  { %529 = vadd.xlane.f32.xlu0 %v770_v2 }
 0x3c0   :  { %v520_v3 = vpop.xlane.xlu1 %519 }
 0x3c1   :  { %771 = vlog2.f32 %v520_v3 }
 0x3c4   :  { %v524_v4 = vpop.xlane.xlu1 %523 }
 0x3c5   :  { %773 = vlog2.f32 %v524_v4  ;;  %v518_v5 = vpop.xlane.xlu0 %517 }
 0x3c6   :  { %775 = vlog2.f32 %v518_v5 }
 0x3c9   :  { %v522_v6 = vpop.xlane.xlu0 %521 }
 0x3ca   :  { %777 = vlog2.f32 %v522_v6 }
 0x3cb   :  { %v772_v7 = vpop.eup %771 }
 0x3cc   :  { %v536_v8 = vmul.f32 0.6931472, %v772_v7  ;;  %v528_v9 = vpop.xlane.xlu1 %527 }
 0x3cd   :  { %779 = vlog2.f32 %v528_v9  ;;  %v526_v10 = vpop.xlane.xlu0 %525 }
 0x3ce   :  { %v550_v11 = vsub.f32 %v959_v36, %v536_v8  ;;  %781 = vlog2.f32 %v526_v10 }
 0x3cf   :  { %v774_v12 = vpop.eup %773 }
 0x3d0   :  { %v776_v13 = vpop.eup %775  ;;  %558 = vst [vmem:[#allocation2 + $0x8] sm:$0xff] %v550_v11  ;;  %v540_v14 = vmul.f32 0.6931472, %v774_v12  ;;  %v532_v15 = vpop.xlane.xlu1 %531 }
 0x3d1   :  { %v534_v16 = vmul.f32 0.6931472, %v776_v13  ;;  %783 = vlog2.f32 %v532_v15  ;;  %v530_v17 = vpop.xlane.xlu0 %529 }
 0x3d2   :  { %v552_v18 = vsub.f32 %v962_v40, %v540_v14  ;;  %785 = vlog2.f32 %v530_v17 }
 0x3d3   :  { %v549_v19 = vsub.f32 %v964_v41, %v534_v16 }
 0x3d4   :  { %v778_v20 = vpop.eup %777  ;;  %560 = vst [vmem:[#allocation2 + $0x18] sm:$0xff] %v552_v18 }
 0x3d5   :  { %557 = vst [vmem:[#allocation2] sm:$0xff] %v549_v19  ;;  %v538_v21 = vmul.f32 0.6931472, %v778_v20 }
 0x3d7   :  { %v780_v22 = vpop.eup %779  ;;  %v551_v23 = vsub.f32 %v968_v45, %v538_v21 }
 0x3d8   :  { %v782_v24 = vpop.eup %781  ;;  %v544_v25 = vmul.f32 0.6931472, %v780_v22 }
 0x3d9   :  { %559 = vst [vmem:[#allocation2 + $0x10] sm:$0xff] %v551_v23  ;;  %v542_v26 = vmul.f32 0.6931472, %v782_v24 }
 0x3da   :  { %v554_v27 = vsub.f32 %v973_v50, %v544_v25 }
 0x3db   :  { %v784_v28 = vpop.eup %783  ;;  %v553_v29 = vsub.f32 %v970_v47, %v542_v26 }
 0x3dc   :  { %v786_v30 = vpop.eup %785  ;;  %562 = vst [vmem:[#allocation2 + $0x28] sm:$0xff] %v554_v27  ;;  %v548_v31 = vmul.f32 0.6931472, %v784_v28 }
 0x3dd   :  { %561 = vst [vmem:[#allocation2 + $0x20] sm:$0xff] %v553_v29  ;;  %v546_v32 = vmul.f32 0.6931472, %v786_v30 }
 0x3de   :  { %v556_v33 = vsub.f32 %v979_v57, %v548_v31 }
 0x3df   :  { %v555_v34 = vsub.f32 %v976_v53, %v546_v32 }
 0x3e0   :  { %564 = vst [vmem:[#allocation2 + $0x38] sm:$0xff] %v556_v33 }
 0x3e1   :  { %563 = vst [vmem:[#allocation2 + $0x30] sm:$0xff] %v555_v34 }
 0x3e2   :  { %798 = shalt.err (!%p795_p4)
}
 0x3e3   :  { %s799_s29 = scalar_lea.hbm %s1010_s7, 1024 }
 0x3e4   :  { %p800_p5 = scmp.ne.s32.totalorder %s1010_s7, %s799_s29  ;;  %p803_p6 = scmp.lt.u32.totalorder %s799_s29, %s1010_s7 }
 0x3e6   :  { %p805_p7 = pnand %p803_p6, %p800_p5 }
 0x3e8   :  { %808 = shalt.err (!%p805_p7)
}
 0x3e9   :  { %s812_s11 = smov 128   ;;  %s813_s12 = smov 8  }
 0x3ea   :  { %576 = dma.vmem_to_hbm [thread:$0]  %s571_s25, 1024, %s1010_s7, [#allocation3], %s812_s11, %s812_s11, %s813_s12  }
 0x3eb   :  { %809 = dma.done.wait [#allocation3], 1024  }
 0x3ec   :  { %810 = vsyncadd [#allocation3], 4294966272 }
 0x3ed   :  { %580 = vsyncpa [#allocation3], 1 }

</bundles_post_ra>
